<compile_context>
chip_gen: v7x
topology: tpu7x:2x2x1
jax: 0.10.0
libtpu: 0.0.40
codegen_flags: <defaults>
</compile_context>

<pallas_src>
import jax
import jax.numpy as jnp
from jax import lax
from jax.experimental import pallas as pl
from jax.experimental.pallas import tpu as pltpu


def rnn_kernel(tok_ref, emb_ref, wih_ref, whh_ref, b_ref, wout_ref, bout_ref, o_ref):
    """Embedding gather + vanilla RNN recurrence + final linear head, all in VMEM/vregs.

    tok_ref:  (T*Bp, 1) int32  time-major, batch-padded token ids
    emb_ref:  (V, E)           embedding table
    wih_ref:  (E, H)           input->hidden weights (transposed vs. PyTorch)
    whh_ref:  (H, H)           hidden->hidden weights (transposed vs. PyTorch)
    b_ref:    (1, H)           combined bias (b_ih + b_hh)
    wout_ref: (H, Op)          output projection weights, lane-padded to Op=128
    bout_ref: (1, Op)          output projection bias, lane-padded
    o_ref:    (Bp, Op)         final output (padded); real rows/cols sliced in wrapper
    """
    TB = tok_ref.shape[0]
    V, E = emb_ref.shape
    H = whh_ref.shape[0]
    Bp, Op = o_ref.shape
    T = TB // Bp

    # --- Embedding gather as a one-hot MXU matmul (exact: 0/1 selector rows). ---
    ids = tok_ref[...]                                            # (TB, 1) int32
    vocab = lax.broadcasted_iota(jnp.int32, (TB, V), 1)           # (TB, V)
    onehot = (ids == vocab).astype(jnp.float32)                   # (TB, V)
    x = jnp.dot(onehot, emb_ref[...], preferred_element_type=jnp.float32)   # (TB, E)

    # --- Hoisted input projection: one big matmul + bias, OFF the serial critical path. ---
    xproj = (
        jnp.dot(x, wih_ref[...], preferred_element_type=jnp.float32) + b_ref[...]
    )                                                              # (TB, H), stays in vregs

    whh = whh_ref[...]                                             # hoist recurrent weight load

    # --- Recurrence: fully unrolled (T is static & small), static slices, h in vregs. ---
    h = jnp.zeros((Bp, H), jnp.float32)
    for t in range(T):
        xp = xproj[t * Bp:(t + 1) * Bp, :]                         # (Bp, H) static slice
        h = jnp.tanh(xp + jnp.dot(h, whh, preferred_element_type=jnp.float32))

    # --- Linear head on the last hidden state: lane-dense (Bp, 128) unmasked store. ---
    o_ref[...] = (
        jnp.dot(h, wout_ref[...], preferred_element_type=jnp.float32) + bout_ref[...]
    )


def rnn_forward(token_ids, emb_table, w_ih, w_hh, b_ih, b_hh, w_out, b_out):
    """token_ids: (B, T) int32. Returns (B, out_dim) float32."""
    B, T = token_ids.shape
    V, E = emb_table.shape
    H = w_hh.shape[0]
    O = w_out.shape[0]

    Bp = max(8, ((B + 7) // 8) * 8)      # pad batch to a full sublane group
    Op = max(128, ((O + 127) // 128) * 128)  # lane-dense output width

    # Padded rows use token id 0; the recurrence is row-independent so they never mix
    # with real rows and are sliced away below.
    tok_pad = jnp.zeros((Bp, T), jnp.int32).at[:B, :].set(token_ids.astype(jnp.int32))
    tok_tm = jnp.transpose(tok_pad, (1, 0)).reshape(T * Bp, 1)     # time-major (T*Bp, 1)

    wih_t = w_ih.T.astype(jnp.float32)                             # (E, H)
    whh_t = w_hh.T.astype(jnp.float32)                             # (H, H)
    b = (b_ih + b_hh).reshape(1, H).astype(jnp.float32)            # (1, H)
    wout_p = jnp.zeros((H, Op), jnp.float32).at[:, :O].set(w_out.T.astype(jnp.float32))
    bout_p = jnp.zeros((1, Op), jnp.float32).at[:, :O].set(b_out.astype(jnp.float32))

    vmem = pl.BlockSpec(memory_space=pltpu.MemorySpace.VMEM)

    out_pad = pl.pallas_call(
        rnn_kernel,
        out_shape=jax.ShapeDtypeStruct((Bp, Op), jnp.float32),
        in_specs=[vmem] * 7,
        out_specs=vmem,
    )(tok_tm, emb_table.astype(jnp.float32), wih_t, whh_t, b, wout_p, bout_p)

    return out_pad[:B, :O]


def rnn_reference(token_ids, emb_table, w_ih, w_hh, b_ih, b_hh, w_out, b_out):
    """Pure-JAX reference reproducing PyTorch nn.RNN(batch_first=True) semantics."""
    x = jnp.take(emb_table, token_ids, axis=0)  # (B, T, E)
    B, T, _ = x.shape
    H = w_hh.shape[0]
    h = jnp.zeros((B, H), jnp.float32)
    for t in range(T):
        h = jnp.tanh(x[:, t, :] @ w_ih.T + b_ih + h @ w_hh.T + b_hh)
    return h @ w_out.T + b_out


if __name__ == "__main__":
    # Module hyperparameters (small, consistent with the forward):
    #   vs=32 vocab, emb_dim=16, nl=1 (nn.RNN default num_layers=1), hid=32, out=8
    vs, emb_dim, nl, hid, out_dim = 32, 16, 1, 32, 8
    B, T = 2, 8

    key = jax.random.PRNGKey(0)
    k_tok, k_emb, k_wih, k_whh, k_bih, k_bhh, k_wo, k_bo = jax.random.split(key, 8)

    token_ids = jax.random.randint(k_tok, (B, T), 0, vs, dtype=jnp.int32)

    emb_table = jax.random.normal(k_emb, (vs, emb_dim), jnp.float32) * 0.1
    w_ih = jax.random.normal(k_wih, (hid, emb_dim), jnp.float32) * 0.1  # PyTorch weight_ih_l0
    w_hh = jax.random.normal(k_whh, (hid, hid), jnp.float32) * 0.1      # PyTorch weight_hh_l0
    b_ih = jax.random.normal(k_bih, (hid,), jnp.float32) * 0.1
    b_hh = jax.random.normal(k_bhh, (hid,), jnp.float32) * 0.1
    w_out = jax.random.normal(k_wo, (out_dim, hid), jnp.float32) * 0.1  # PyTorch Linear weight
    b_out = jax.random.normal(k_bo, (out_dim,), jnp.float32) * 0.1

    result = rnn_forward(token_ids, emb_table, w_ih, w_hh, b_ih, b_hh, w_out, b_out)
    result = jax.block_until_ready(result)

    ref = rnn_reference(token_ids, emb_table, w_ih, w_hh, b_ih, b_hh, w_out, b_out)
    assert result.shape == (B, out_dim)
    assert jnp.allclose(result, ref, atol=1e-5, rtol=1e-5), "mismatch vs. reference"

    print("KERNEL_OK")
</pallas_src>

<mosaic_0001>
module attributes {stable_mosaic.version = 11 : i64} {
  func.func @rnn_kernel(%arg0: memref<64x1xi32, #tpu.memory_space<vmem>>, %arg1: memref<32x16xf32, #tpu.memory_space<vmem>>, %arg2: memref<16x32xf32, #tpu.memory_space<vmem>>, %arg3: memref<32x32xf32, #tpu.memory_space<vmem>>, %arg4: memref<1x32xf32, #tpu.memory_space<vmem>>, %arg5: memref<32x128xf32, #tpu.memory_space<vmem>>, %arg6: memref<1x128xf32, #tpu.memory_space<vmem>>, %arg7: memref<8x128xf32, #tpu.memory_space<vmem>>) attributes {dimension_semantics = [], scalar_prefetch = 0 : i64, scratch_operands = 0 : i64, tpu.core_type = #tpu.core_type<tc>} {
    %c0 = arith.constant 0 : index
    %c0_0 = arith.constant 0 : index
    %0 = vector.load %arg0[%c0, %c0_0] : memref<64x1xi32, #tpu.memory_space<vmem>>, vector<64x1xi32>
    %1 = tpu.iota {dimensions = array<i32: 1>} : vector<64x32xi32>
    %2 = vector.broadcast %0 : vector<64x1xi32> to vector<64x32xi32>
    %3 = arith.cmpi eq, %2, %1 : vector<64x32xi32>
    %4 = arith.extui %3 : vector<64x32xi1> to vector<64x32xi32>
    %5 = arith.sitofp %4 : vector<64x32xi32> to vector<64x32xf32>
    %c0_1 = arith.constant 0 : index
    %c0_2 = arith.constant 0 : index
    %6 = vector.load %arg1[%c0_1, %c0_2] : memref<32x16xf32, #tpu.memory_space<vmem>>, vector<32x16xf32>
    %cst = arith.constant dense<0.000000e+00> : vector<64x16xf32>
    %7 = tpu.matmul %5, %6, %cst {dimension_numbers = #tpu.dot_dimension_numbers<[1], [0], [0], [1], [0, 0, 1, 1], [], []>} : vector<64x32xf32>, vector<32x16xf32>, vector<64x16xf32> -> vector<64x16xf32>
    %c0_3 = arith.constant 0 : index
    %c0_4 = arith.constant 0 : index
    %8 = vector.load %arg2[%c0_3, %c0_4] : memref<16x32xf32, #tpu.memory_space<vmem>>, vector<16x32xf32>
    %cst_5 = arith.constant dense<0.000000e+00> : vector<64x32xf32>
    %9 = tpu.matmul %7, %8, %cst_5 {dimension_numbers = #tpu.dot_dimension_numbers<[1], [0], [0], [1], [0, 0, 1, 1], [], []>} : vector<64x16xf32>, vector<16x32xf32>, vector<64x32xf32> -> vector<64x32xf32>
    %c0_6 = arith.constant 0 : index
    %c0_7 = arith.constant 0 : index
    %10 = vector.load %arg4[%c0_6, %c0_7] : memref<1x32xf32, #tpu.memory_space<vmem>>, vector<1x32xf32>
    %11 = vector.broadcast %10 : vector<1x32xf32> to vector<64x32xf32>
    %12 = arith.addf %9, %11 : vector<64x32xf32>
    %c0_8 = arith.constant 0 : index
    %c0_9 = arith.constant 0 : index
    %13 = vector.load %arg3[%c0_8, %c0_9] : memref<32x32xf32, #tpu.memory_space<vmem>>, vector<32x32xf32>
    %cst_10 = arith.constant 0.000000e+00 : f32
    %14 = vector.broadcast %cst_10 : f32 to vector<8x32xf32>
    %15 = vector.extract_strided_slice %12 {offsets = [0, 0], sizes = [8, 32], strides = [1, 1]} : vector<64x32xf32> to vector<8x32xf32>
    %cst_11 = arith.constant dense<0.000000e+00> : vector<8x32xf32>
    %16 = tpu.matmul %14, %13, %cst_11 {dimension_numbers = #tpu.dot_dimension_numbers<[1], [0], [0], [1], [0, 0, 1, 1], [], []>} : vector<8x32xf32>, vector<32x32xf32>, vector<8x32xf32> -> vector<8x32xf32>
    %17 = arith.addf %15, %16 : vector<8x32xf32>
    %18 = math.tanh %17 : vector<8x32xf32>
    %19 = vector.extract_strided_slice %12 {offsets = [8, 0], sizes = [8, 32], strides = [1, 1]} : vector<64x32xf32> to vector<8x32xf32>
    %cst_12 = arith.constant dense<0.000000e+00> : vector<8x32xf32>
    %20 = tpu.matmul %18, %13, %cst_12 {dimension_numbers = #tpu.dot_dimension_numbers<[1], [0], [0], [1], [0, 0, 1, 1], [], []>} : vector<8x32xf32>, vector<32x32xf32>, vector<8x32xf32> -> vector<8x32xf32>
    %21 = arith.addf %19, %20 : vector<8x32xf32>
    %22 = math.tanh %21 : vector<8x32xf32>
    %23 = vector.extract_strided_slice %12 {offsets = [16, 0], sizes = [8, 32], strides = [1, 1]} : vector<64x32xf32> to vector<8x32xf32>
    %cst_13 = arith.constant dense<0.000000e+00> : vector<8x32xf32>
    %24 = tpu.matmul %22, %13, %cst_13 {dimension_numbers = #tpu.dot_dimension_numbers<[1], [0], [0], [1], [0, 0, 1, 1], [], []>} : vector<8x32xf32>, vector<32x32xf32>, vector<8x32xf32> -> vector<8x32xf32>
    %25 = arith.addf %23, %24 : vector<8x32xf32>
    %26 = math.tanh %25 : vector<8x32xf32>
    %27 = vector.extract_strided_slice %12 {offsets = [24, 0], sizes = [8, 32], strides = [1, 1]} : vector<64x32xf32> to vector<8x32xf32>
    %cst_14 = arith.constant dense<0.000000e+00> : vector<8x32xf32>
    %28 = tpu.matmul %26, %13, %cst_14 {dimension_numbers = #tpu.dot_dimension_numbers<[1], [0], [0], [1], [0, 0, 1, 1], [], []>} : vector<8x32xf32>, vector<32x32xf32>, vector<8x32xf32> -> vector<8x32xf32>
    %29 = arith.addf %27, %28 : vector<8x32xf32>
    %30 = math.tanh %29 : vector<8x32xf32>
    %31 = vector.extract_strided_slice %12 {offsets = [32, 0], sizes = [8, 32], strides = [1, 1]} : vector<64x32xf32> to vector<8x32xf32>
    %cst_15 = arith.constant dense<0.000000e+00> : vector<8x32xf32>
    %32 = tpu.matmul %30, %13, %cst_15 {dimension_numbers = #tpu.dot_dimension_numbers<[1], [0], [0], [1], [0, 0, 1, 1], [], []>} : vector<8x32xf32>, vector<32x32xf32>, vector<8x32xf32> -> vector<8x32xf32>
    %33 = arith.addf %31, %32 : vector<8x32xf32>
    %34 = math.tanh %33 : vector<8x32xf32>
    %35 = vector.extract_strided_slice %12 {offsets = [40, 0], sizes = [8, 32], strides = [1, 1]} : vector<64x32xf32> to vector<8x32xf32>
    %cst_16 = arith.constant dense<0.000000e+00> : vector<8x32xf32>
    %36 = tpu.matmul %34, %13, %cst_16 {dimension_numbers = #tpu.dot_dimension_numbers<[1], [0], [0], [1], [0, 0, 1, 1], [], []>} : vector<8x32xf32>, vector<32x32xf32>, vector<8x32xf32> -> vector<8x32xf32>
    %37 = arith.addf %35, %36 : vector<8x32xf32>
    %38 = math.tanh %37 : vector<8x32xf32>
    %39 = vector.extract_strided_slice %12 {offsets = [48, 0], sizes = [8, 32], strides = [1, 1]} : vector<64x32xf32> to vector<8x32xf32>
    %cst_17 = arith.constant dense<0.000000e+00> : vector<8x32xf32>
    %40 = tpu.matmul %38, %13, %cst_17 {dimension_numbers = #tpu.dot_dimension_numbers<[1], [0], [0], [1], [0, 0, 1, 1], [], []>} : vector<8x32xf32>, vector<32x32xf32>, vector<8x32xf32> -> vector<8x32xf32>
    %41 = arith.addf %39, %40 : vector<8x32xf32>
    %42 = math.tanh %41 : vector<8x32xf32>
    %43 = vector.extract_strided_slice %12 {offsets = [56, 0], sizes = [8, 32], strides = [1, 1]} : vector<64x32xf32> to vector<8x32xf32>
    %cst_18 = arith.constant dense<0.000000e+00> : vector<8x32xf32>
    %44 = tpu.matmul %42, %13, %cst_18 {dimension_numbers = #tpu.dot_dimension_numbers<[1], [0], [0], [1], [0, 0, 1, 1], [], []>} : vector<8x32xf32>, vector<32x32xf32>, vector<8x32xf32> -> vector<8x32xf32>
    %45 = arith.addf %43, %44 : vector<8x32xf32>
    %46 = math.tanh %45 : vector<8x32xf32>
    %c0_19 = arith.constant 0 : index
    %c0_20 = arith.constant 0 : index
    %47 = vector.load %arg5[%c0_19, %c0_20] : memref<32x128xf32, #tpu.memory_space<vmem>>, vector<32x128xf32>
    %cst_21 = arith.constant dense<0.000000e+00> : vector<8x128xf32>
    %48 = tpu.matmul %46, %47, %cst_21 {dimension_numbers = #tpu.dot_dimension_numbers<[1], [0], [0], [1], [0, 0, 1, 1], [], []>} : vector<8x32xf32>, vector<32x128xf32>, vector<8x128xf32> -> vector<8x128xf32>
    %c0_22 = arith.constant 0 : index
    %c0_23 = arith.constant 0 : index
    %49 = vector.load %arg6[%c0_22, %c0_23] : memref<1x128xf32, #tpu.memory_space<vmem>>, vector<1x128xf32>
    %50 = vector.broadcast %49 : vector<1x128xf32> to vector<8x128xf32>
    %51 = arith.addf %48, %50 : vector<8x128xf32>
    %c0_24 = arith.constant 0 : index
    %c0_25 = arith.constant 0 : index
    %52 = vector.load %arg7[%c0_24, %c0_25] : memref<8x128xf32, #tpu.memory_space<vmem>>, vector<8x128xf32>
    tpu.vector_store %arg7[%c0_24, %c0_25], %51 {strides = array<i32>} : memref<8x128xf32, #tpu.memory_space<vmem>>, vector<8x128xf32>,
    return
  }
}

</mosaic_0001>

<bundles_post_ra>
// kernel: tpu_custom_call.1
= control target key start
LH: loop header
LB: loop body
LE: loop exit
PB: predicated region body
PF: predicated region fallthrough
CT: control target
= control target key end

     0   :  { %v1410_v2 = vmov 0   ;;  %s1637_s0 = inlined_call_operand.vmem [shape: s32[64,1], index: 0, kind: input, shape index: {}]   ;;  %s1638_s1 = inlined_call_operand.vmem [shape: f32[32,16], index: 1, kind: input, shape index: {}]   ;;  %s1639_s2 = inlined_call_operand.vmem [shape: f32[16,32], index: 2, kind: input, shape index: {}]   ;;  %s1640_s3 = inlined_call_operand.vmem [shape: f32[32,32], index: 3, kind: input, shape index: {}]   ;;  %s1641_s4 = inlined_call_operand.vmem [shape: f32[1,32], index: 4, kind: input, shape index: {}]   ;;  %s1642_s5 = inlined_call_operand.vmem [shape: f32[32,128], index: 5, kind: input, shape index: {}]   ;;  %s1643_s6 = inlined_call_operand.vmem [shape: f32[1,128], index: 6, kind: input, shape index: {}]   ;;  %s1644_s7 = inlined_call_operand.hbm [shape: f32[8,128], index: 7, kind: output, shape index: {}]  }
   0x1   :  { %v29_v0 = vld [vmem:[%s1637_s0 + $0x10] sm:$0xff]  ;;  %v27_v1 = vld [vmem:[%s1637_s0] sm:$0xff]  ;;  %1369 = vset.pattern.permute.xlu1 %v1410_v2  ;;  %1368 = vset.pattern.permute.xlu0 %v1410_v2  ;;  %v30_v3 = vld [vmem:[%s1637_s0 + $0x18] sm:$0xff] }
   0x2   :  { %44 = vperm.xlu1 %1369, %v29_v0   ;;  %38 = vperm.xlu0 %1368, %v27_v1   ;;  %v28_v4 = vld [vmem:[%s1637_s0 + $0x8] sm:$0xff]  ;;  %v85_v5 = vld [vmem:[%s1638_s1] sm:$0xff]  ;;  %v87_v7 = vld [vmem:[%s1638_s1 + $0x10] sm:$0xff] }
   0x3   :  { %v86_v6 = vld [vmem:[%s1638_s1 + $0x8] sm:$0xff]  ;;  %v88_v8 = vld [vmem:[%s1638_s1 + $0x18] sm:$0xff] }
   0x4   :  { %v1297_v9 = vpack.c.bf16 %v86_v6, %v85_v5 }
   0x5   :  { %12 = vsyncpa [#allocation3], 0  ;;  %v1301_v10 = vpack.c.bf16 %v88_v8, %v87_v7  ;;  %v32_v11 = vld [vmem:[%s1637_s0 + $0x28] sm:$0xff]  ;;  %v31_v12 = vld [vmem:[%s1637_s0 + $0x20] sm:$0xff]  ;;  %v35_v18 = vlaneseq  ;;  %vm89_vm0 = vcmask 261120   ;;  %v1411_v22 = vmov 0.0  }
   0x6   :  { %47 = vperm.xlu1 %1369, %v30_v3   ;;  %41 = vperm.xlu0 %1368, %v28_v4   ;;  %v34_v13 = vld [vmem:[%s1637_s0 + $0x38] sm:$0xff]  ;;  %v33_v14 = vld [vmem:[%s1637_s0 + $0x30] sm:$0xff]  ;;  %v219_v15 = vld [vmem:[%s1639_s2] sm:$0xff]  ;;  %v1412_v37 = vmov 0.0|0.0   ;;  %vm1413_vm9 = vmmov 0   ;;  %vm228_vm10 = vcmask 130048  }
   0x7   :  { %1298 = vmatprep.subr.bf16.mxu0 %v1297_v9  ;;  %v220_v16 = vld [vmem:[%s1639_s2 + $0x8] sm:$0xff]  ;;  %v36_v19 = vand.u32 127, %v35_v18  ;;  %v358_v38 = vld [vmem:[%s1640_s3] sm:$0xff]  ;;  %v360_v41 = vld [vmem:[%s1640_s3 + $0x10] sm:$0xff]  ;;  %s1414_s21 = smov [#allocation2]  }
   0x8   :  { %1300 = vmatpush3.bf16.msra.mxu0 %v1297_v9  ;;  %v1305_v17 = vpack.c.bf16 %v220_v16, %v219_v15  ;;  %v359_v39 = vld [vmem:[%s1640_s3 + $0x8] sm:$0xff]  ;;  %v361_v42 = vld [vmem:[%s1640_s3 + $0x18] sm:$0xff]  ;;  %v1077_v52 = vld [vmem:[%s1641_s4] ss:$0 sm:$0xff]  ;;  %s1053_s1 = sshll.u32 %s1414_s21, 4  ;;  %s1054_s1 = int_to_ptr.vmem [resolvable:$true] %s1053_s1 }
   0x9   :  { %1302 = vmatprep.subr.bf16.mxu0 %v1301_v10  ;;  %v1521_v40 = vpack.c.bf16 %v359_v39, %v358_v38  ;;  %v1531_v43 = vpack.c.bf16 %v361_v42, %v360_v41  ;;  %v965_v38 = vld [vmem:[%s1642_s5 + $0x18] sm:$0xff]  ;;  %p1391_p1 = scmp.lt.s32.totalorder %s1054_s1, %s1054_s1 }
   0xa   :  { %53 = vperm.xlu1 %1369, %v32_v11   ;;  %50 = vperm.xlu0 %1368, %v31_v12  }
   0xb   :  { %1306 = vmatprep.subr.bf16.mxu1 %v1305_v17 }
   0xc   :  { %1304 = vmatpush3.bf16.msra.mxu0 %v1301_v10  ;;  %1308 = vmatpush3.bf16.msra.mxu1 %v1305_v17 }
   0xd   :  { %1309 = vmatprep.subr.bf16.mxu1 %v1412_v37  ;;  %1315 = vmatprep.subr.bf16.mxu0 %v1412_v37 }
   0xe   :  { %59 = vperm.xlu1 %1369, %v34_v13   ;;  %56 = vperm.xlu0 %1368, %v33_v14  }
  0x81   :  { %v45_v20 = vpop.permute.xlu1 %44  ;;  %v39_v21 = vpop.permute.xlu0 %38 }
  0x82   :  { %vm61_vm1 = vcmp.eq.s32.totalorder %v39_v21, %v36_v19  ;;  %vm63_vm2 = vcmp.eq.s32.totalorder %v45_v20, %v36_v19 }
  0x83   :  { %v1061_v23 = vsel %vm61_vm1, 1.0, %v1411_v22  ;;  %v1063_v26 = vsel %vm63_vm2, 1.0, %v1411_v22 }
  0x84   :  { %1170 = vmatprep.mubr.msk.f32.mxu0 %vm89_vm0, %v1061_v23 }
  0x85   :  { %v48_v24 = vpop.permute.xlu1 %47  ;;  %v42_v25 = vpop.permute.xlu0 %41 }
  0x86   :  { %vm62_vm3 = vcmp.eq.s32.totalorder %v42_v25, %v36_v19  ;;  %vm64_vm4 = vcmp.eq.s32.totalorder %v48_v24, %v36_v19 }
  0x87   :  { %v1062_v27 = vsel %vm62_vm3, 1.0, %v1411_v22  ;;  %v1064_v30 = vsel %vm64_vm4, 1.0, %v1411_v22 }
  0x88   :  { %1171 = vmatmul.mubr.msk.f32.vlgmr.msra.gmra.mrb[0].mxu0 %vm89_vm0, %v1062_v27 }
  0x89   :  { %v54_v28 = vpop.permute.xlu1 %53  ;;  %1173 = vmatprep.mubr.msk.f32.mxu0 %vm89_vm0, %v1063_v26  ;;  %v51_v29 = vpop.permute.xlu0 %50  ;;  %1317 = vmatpush3.bf16.msra.mxu0 %v1521_v40 }
  0x8a   :  { %vm65_vm5 = vcmp.eq.s32.totalorder %v51_v29, %v36_v19  ;;  %vm66_vm6 = vcmp.eq.s32.totalorder %v54_v28, %v36_v19  ;;  %1318 = vmatprep.subr.bf16.mxu0 %v1412_v37 }
  0x8b   :  { %v1065_v31 = vsel %vm65_vm5, 1.0, %v1411_v22  ;;  %v1066_v34 = vsel %vm66_vm6, 1.0, %v1411_v22 }
  0x8c   :  { %1174 = vmatmul.mubr.msk.f32.gmra.mrb[2].mxu0 %vm89_vm0, %v1064_v30 }
  0x8d   :  { %v60_v32 = vpop.permute.xlu1 %59  ;;  %1176 = vmatprep.mubr.msk.f32.mxu0 %vm89_vm0, %v1065_v31  ;;  %v57_v33 = vpop.permute.xlu0 %56  ;;  %1320 = vmatpush3.bf16.msra.mxu0 %v1531_v43 }
  0x8e   :  { %vm67_vm7 = vcmp.eq.s32.totalorder %v57_v33, %v36_v19  ;;  %vm68_vm8 = vcmp.eq.s32.totalorder %v60_v32, %v36_v19  ;;  %1327 = vmatprep.subr.bf16.mxu0 %v1412_v37 }
  0x8f   :  { %v1067_v35 = vsel %vm67_vm7, 1.0, %v1411_v22  ;;  %v1068_v36 = vsel %vm68_vm8, 1.0, %v1411_v22 }
  0x90   :  { %1177 = vmatmul.mubr.msk.f32.gmra.mrb[4].mxu0 %vm89_vm0, %v1066_v34  ;;  %v962_v34 = vld [vmem:[%s1642_s5] sm:$0xff] }
  0x91   :  { %1179 = vmatprep.mubr.msk.f32.mxu0 %vm89_vm0, %v1067_v35  ;;  %v963_v35 = vld [vmem:[%s1642_s5 + $0x8] sm:$0xff] }
  0x94   :  { %1180 = vmatmul.mubr.msk.f32.gmra.mrb[6].mxu0 %vm89_vm0, %v1068_v36  ;;  %v1358_v36 = vpack.c.bf16 %v963_v35, %v962_v34 }
  0x95   :  { %1217 = vmatprep.mubr.msk.f32.mxu0 %vm1413_vm9, %v1411_v22 }
 0x15b   :  { %v1172_v44 = vpop.f32.mrb[0].mxu0 }
 0x15c   :  { %v180_v45 = vpop.f32.mrb[1].mxu0 }
 0x15d   :  { %1186 = vmatprep.mubr.msk.f32.mxu1 %vm228_vm10, %v180_v45 }
 0x15e   :  { %1187 = vmatmul.mubr.msk.f32.vlgmr.msra.gmra.mrb[0].mxu1 %vm228_vm10, %v1172_v44  ;;  %v1093_v44 = vld [vmem:[%s1643_s6] ss:$0 sm:$0xff] }
 0x15f   :  { %1311 = vmatpush3.bf16.msra.mxu1 %v1521_v40  ;;  %v1175_v46 = vpop.f32.mrb[2].mxu0 }
 0x160   :  { %v190_v47 = vpop.f32.mrb[3].mxu0  ;;  %1312 = vmatprep.subr.bf16.mxu1 %v1412_v37 }
 0x161   :  { %1189 = vmatprep.mubr.msk.f32.mxu1 %vm228_vm10, %v190_v47 }
 0x162   :  { %1190 = vmatmul.mubr.msk.f32.gmra.mrb[2].mxu1 %vm228_vm10, %v1175_v46 }
 0x163   :  { %v1178_v48 = vpop.f32.mrb[4].mxu0  ;;  %1314 = vmatpush3.bf16.msra.mxu1 %v1531_v43 }
 0x164   :  { %v200_v49 = vpop.f32.mrb[5].mxu0  ;;  %1321 = vmatprep.subr.bf16.mxu1 %v1412_v37 }
 0x165   :  { %1192 = vmatprep.mubr.msk.f32.mxu1 %vm228_vm10, %v200_v49 }
 0x166   :  { %1193 = vmatmul.mubr.msk.f32.gmra.mrb[4].mxu1 %vm228_vm10, %v1178_v48 }
 0x167   :  { %v1181_v50 = vpop.f32.mrb[6].mxu0 }
 0x168   :  { %v210_v51 = vpop.f32.mrb[7].mxu0 }
 0x169   :  { %1195 = vmatprep.mubr.msk.f32.mxu1 %vm228_vm10, %v210_v51 }
 0x16a   :  { %1196 = vmatmul.mubr.msk.f32.gmra.mrb[6].mxu1 %vm228_vm10, %v1181_v50 }
 0x16b   :  { %1206 = vmatprep.mubr.msk.f32.mxu1 %vm1413_vm9, %v1411_v22 }
 0x16e   :  { %1207 = vmatmul.mubr.f32.vlgmr.msra.gmra.mrb[8].mxu1 %v1411_v22 }
 0x16f   :  { %1323 = vmatpush3.bf16.msra.mxu1 %v1521_v40  ;;  %1228 = vmatprep.mubr.msk.f32.mxu1 %vm1413_vm9, %v1411_v22 }
 0x170   :  { %1324 = vmatprep.subr.bf16.mxu1 %v1412_v37 }
 0x173   :  { %1326 = vmatpush3.bf16.msra.mxu1 %v1531_v43 }
 0x174   :  { %1333 = vmatprep.subr.bf16.mxu1 %v1412_v37 }
 0x231   :  { %v1188_v53 = vpop.f32.mrb[0].mxu1 }
 0x232   :  { %v325_v54 = vadd.f32 %v1188_v53, %v1077_v52  ;;  %v319_v55 = vpop.f32.mrb[1].mxu1 }
 0x233   :  { %v320_v4 = vadd.f32 %v1077_v52, %v319_v55 }
 0x235   :  { %v1191_v56 = vpop.f32.mrb[2].mxu1 }
 0x236   :  { %v335_v57 = vadd.f32 %v1191_v56, %v1077_v52  ;;  %v329_v58 = vpop.f32.mrb[3].mxu1 }
 0x237   :  { %v330_v59 = vadd.f32 %v1077_v52, %v329_v58 }
 0x239   :  { %v1194_v60 = vpop.f32.mrb[4].mxu1 }
 0x23a   :  { %v1561_v61 = vadd.f32 %v1194_v60, %v1077_v52  ;;  %v339_v62 = vpop.f32.mrb[5].mxu1 }
 0x23b   :  { %v340_v63 = vadd.f32 %v1077_v52, %v339_v62 }
 0x23d   :  { %v1197_v0 = vpop.f32.mrb[6].mxu1 }
 0x23e   :  { %v1563_v1 = vadd.f32 %v1197_v0, %v1077_v52  ;;  %v349_v2 = vpop.f32.mrb[7].mxu1 }
 0x23f   :  { %v1565_v3 = vadd.f32 %v1077_v52, %v349_v2 }
 0x241   :  { %v431_v5 = vpop.f32.mrb[8].mxu1 }
 0x242   :  { %v435_v6 = vadd.f32 %v431_v5, %v320_v4  ;;  %v1208_v7 = vpop.f32.mrb[9].mxu1 }
 0x244   :  { %1370 = vtanh.f32 %v435_v6 }
 0x24e   :  { %v1371_v8 = vpop.eup %1370 }
 0x24f   :  { %1218 = vmatmul.mubr.msk.f32.vlgmr.msra.gmra.mrb[8].mxu0 %vm89_vm0, %v1371_v8 }
 0x250   :  { %1329 = vmatpush3.bf16.msra.mxu0 %v1521_v40  ;;  %1239 = vmatprep.mubr.msk.f32.mxu0 %vm1413_vm9, %v1411_v22 }
 0x251   :  { %1330 = vmatprep.subr.bf16.mxu0 %v1412_v37 }
 0x254   :  { %1332 = vmatpush3.bf16.msra.mxu0 %v1531_v43 }
 0x255   :  { %1339 = vmatprep.subr.bf16.mxu0 %v1412_v37 }
 0x322   :  { %v506_v9 = vpop.f32.mrb[8].mxu0 }
 0x323   :  { %v510_v10 = vadd.f32 %v506_v9, %v325_v54  ;;  %v1219_v11 = vpop.f32.mrb[9].mxu0 }
 0x325   :  { %1372 = vtanh.f32 %v510_v10 }
 0x32f   :  { %v1373_v12 = vpop.eup %1372 }
 0x330   :  { %1229 = vmatmul.mubr.msk.f32.vlgmr.msra.gmra.mrb[10].mxu1 %vm89_vm0, %v1373_v12 }
 0x331   :  { %1335 = vmatpush3.bf16.msra.mxu1 %v1521_v40  ;;  %1250 = vmatprep.mubr.msk.f32.mxu1 %vm1413_vm9, %v1411_v22 }
 0x332   :  { %1336 = vmatprep.subr.bf16.mxu1 %v1412_v37 }
 0x335   :  { %1338 = vmatpush3.bf16.msra.mxu1 %v1531_v43 }
 0x336   :  { %1345 = vmatprep.subr.bf16.mxu1 %v1412_v37 }
 0x403   :  { %v581_v13 = vpop.f32.mrb[10].mxu1 }
 0x404   :  { %v585_v14 = vadd.f32 %v581_v13, %v330_v59  ;;  %v1230_v15 = vpop.f32.mrb[11].mxu1 }
 0x406   :  { %1374 = vtanh.f32 %v585_v14 }
 0x410   :  { %v1375_v16 = vpop.eup %1374 }
 0x411   :  { %1240 = vmatmul.mubr.msk.f32.vlgmr.msra.gmra.mrb[10].mxu0 %vm89_vm0, %v1375_v16 }
 0x412   :  { %1341 = vmatpush3.bf16.msra.mxu0 %v1521_v40  ;;  %1261 = vmatprep.mubr.msk.f32.mxu0 %vm1413_vm9, %v1411_v22 }
 0x413   :  { %1342 = vmatprep.subr.bf16.mxu0 %v1412_v37 }
 0x416   :  { %1344 = vmatpush3.bf16.msra.mxu0 %v1531_v43 }
 0x417   :  { %1351 = vmatprep.subr.bf16.mxu0 %v1412_v37 }
 0x4e4   :  { %v656_v17 = vpop.f32.mrb[10].mxu0 }
 0x4e5   :  { %v660_v18 = vadd.f32 %v656_v17, %v335_v57  ;;  %v1241_v19 = vpop.f32.mrb[11].mxu0 }
 0x4e7   :  { %1376 = vtanh.f32 %v660_v18 }
 0x4f1   :  { %v1377_v20 = vpop.eup %1376 }
 0x4f2   :  { %1251 = vmatmul.mubr.msk.f32.vlgmr.msra.gmra.mrb[12].mxu1 %vm89_vm0, %v1377_v20 }
 0x4f3   :  { %1347 = vmatpush3.bf16.msra.mxu1 %v1521_v40  ;;  %1272 = vmatprep.mubr.msk.f32.mxu1 %vm1413_vm9, %v1411_v22 }
 0x4f4   :  { %1348 = vmatprep.subr.bf16.mxu1 %v1412_v37 }
 0x4f7   :  { %1350 = vmatpush3.bf16.msra.mxu1 %v1531_v43 }
 0x4f8   :  { %1357 = vmatprep.subr.bf16.mxu1 %v1412_v37 }
 0x5c5   :  { %v731_v21 = vpop.f32.mrb[12].mxu1 }
 0x5c6   :  { %v735_v23 = vadd.f32 %v731_v21, %v340_v63  ;;  %v1252_v24 = vpop.f32.mrb[13].mxu1 }
 0x5c8   :  { %1378 = vtanh.f32 %v735_v23 }
 0x5d2   :  { %v1379_v25 = vpop.eup %1378 }
 0x5d3   :  { %1262 = vmatmul.mubr.msk.f32.vlgmr.msra.gmra.mrb[12].mxu0 %vm89_vm0, %v1379_v25 }
 0x5d4   :  { %1353 = vmatpush3.bf16.msra.mxu0 %v1521_v40  ;;  %1283 = vmatprep.mubr.msk.f32.mxu0 %vm1413_vm9, %v1411_v22 }
 0x5d5   :  { %1354 = vmatprep.subr.bf16.mxu0 %v1412_v37 }
 0x5d8   :  { %1356 = vmatpush3.bf16.msra.mxu0 %v1531_v43 }
 0x6a6   :  { %v806_v26 = vpop.f32.mrb[12].mxu0 }
 0x6a7   :  { %v810_v27 = vadd.f32 %v806_v26, %v1561_v61  ;;  %v1263_v28 = vpop.f32.mrb[13].mxu0 }
 0x6a9   :  { %1380 = vtanh.f32 %v810_v27 }
 0x6b3   :  { %v1381_v29 = vpop.eup %1380 }
 0x6b4   :  { %1273 = vmatmul.mubr.msk.f32.vlgmr.msra.gmra.mrb[14].mxu1 %vm89_vm0, %v1381_v29 }
 0x6b5   :  { %1294 = vmatprep.mubr.msk.f32.mxu1 %vm1413_vm9, %v1411_v22  ;;  %v964_v22 = vld [vmem:[%s1642_s5 + $0x10] sm:$0xff]  ;;  %1359 = vmatpush3.bf16.msra.mxu1 %v1358_v36  ;;  %s1386_s5 = scalar_lea.vmem %s1054_s1, 128 }
 0x6b6   :  { %v1361_v39 = vpack.c.bf16 %v965_v38, %v964_v22  ;;  %1360 = vmatprep.subr.bf16.mxu1 %v1412_v37  ;;  %p1387_p0 = scmp.ne.s32.totalorder %s1054_s1, %s1386_s5  ;;  %p1392_p2 = scmp.lt.s32.totalorder %s1386_s5, %s1386_s5 }
 0x6b8   :  { %p1393_p3 = por %p1392_p2, %p1391_p1 }
 0x6b9   :  { %1362 = vmatpush3.bf16.msra.mxu1 %v1361_v39 }
 0x6ba   :  { %p1394_p4 = pnand %p1393_p3, %p1387_p0 }
 0x787   :  { %v881_v30 = vpop.f32.mrb[14].mxu1 }
 0x788   :  { %v885_v31 = vadd.f32 %v881_v30, %v1565_v3  ;;  %v1274_v32 = vpop.f32.mrb[15].mxu1 }
 0x78a   :  { %1382 = vtanh.f32 %v885_v31 }
 0x794   :  { %v1383_v33 = vpop.eup %1382 }
 0x795   :  { %1284 = vmatmul.mubr.msk.f32.vlgmr.msra.gmra.mrb[14].mxu0 %vm89_vm0, %v1383_v33 }
 0x868   :  { %v956_v40 = vpop.f32.mrb[14].mxu0 }
 0x869   :  { %v960_v41 = vadd.f32 %v956_v40, %v1563_v1  ;;  %v1285_v42 = vpop.f32.mrb[15].mxu0 }
 0x86b   :  { %1384 = vtanh.f32 %v960_v41 }
 0x875   :  { %v1385_v43 = vpop.eup %1384 }
 0x876   :  { %1295 = vmatmul.mubr.msk.f32.vlgmr.msra.gmra.mrb[16].mxu1 %vm89_vm0, %v1385_v43 }
 0x949   :  { %v1042_v45 = vpop.f32.mrb[16].mxu1 }
 0x94a   :  { %v1043_v46 = vadd.f32 %v1093_v44, %v1042_v45  ;;  %v1296_v47 = vpop.f32.mrb[17].mxu1 }
 0x94c   :  { %1046 = vst [vmem:[#allocation2] sm:$0xff] %v1043_v46 }
 0x94d   :  { %1397 = shalt.err (!%p1394_p4)
}
 0x94e   :  { %s1398_s24 = scalar_lea.hbm %s1644_s7, 128 }
 0x94f   :  { %p1399_p5 = scmp.ne.s32.totalorder %s1644_s7, %s1398_s24  ;;  %p1402_p6 = scmp.lt.u32.totalorder %s1398_s24, %s1644_s7 }
 0x951   :  { %p1404_p7 = pnand %p1402_p6, %p1399_p5 }
 0x953   :  { %1407 = shalt.err (!%p1404_p7)
}
 0x954   :  { %1056 = dma.vmem_to_hbm [thread:$0]  %s1054_s1, 128, %s1644_s7, [#allocation3]  }
 0x955   :  { %1408 = dma.done.wait [#allocation3], 128  }
 0x956   :  { %1409 = vsyncadd [#allocation3], 4294967168 }
 0x957   :  { %1060 = vsyncpa [#allocation3], 1 }

</bundles_post_ra>
